<compile_context>
chip_gen: v7x
topology: tpu7x:2x2x1
jax: 0.10.0
libtpu: 0.0.40
codegen_flags: <defaults>
</compile_context>

<pallas_src>
import math

import jax
import jax.numpy as jnp
from jax.experimental import pallas as pl
from jax.experimental.pallas import tpu as pltpu


def str2mask(s: str) -> jnp.ndarray:
    return jnp.array([c == "1" for c in s], dtype=bool)


def _round_up(x: int, m: int) -> int:
    return ((x + m - 1) // m) * m


def _vmem_capacity_bytes() -> int:
    """Generation-aware VMEM capacity (per TensorCore); conservative fallback."""
    try:
        info = pltpu.get_tpu_info()
        cap = int(getattr(info, "vmem_capacity_bytes", 0))
        if cap > 0:
            return cap
    except Exception:
        pass
    return 64 * 1024 * 1024  # v7x per-TC VMEM (worst case of v5e/v6e/v7x)


def _poisson_mask_kernel(u_ref, thr_ref, allowed_ref, out_ref):
    # u_ref       : VMEM (TB, size) f32   uniforms over the full size axis
    # thr_ref     : VMEM (TB, 1)    f32   per-row threshold = k-th smallest allowed uniform
    # allowed_ref : VMEM (1, size)  f32   1.0 where index is allowed, else 0.0 (resident)
    # out_ref     : VMEM (TB, size) int8  boolean mask as 0/1
    sel = jnp.logical_and(u_ref[...] <= thr_ref[...], allowed_ref[...] > 0.0)
    out_ref[...] = sel.astype(jnp.int8)


class PoissonMask:
    """Poisson mask sampler (Pallas TPU implementation)."""

    def __init__(self, size: int, lam: float = 1.0, filtr: str = None):
        self.size = size
        self.lam = lam
        indices = jnp.arange(size, dtype=jnp.int32)
        if filtr is not None:
            indices = indices[str2mask(filtr)]           # concrete, outside jit
        self.indices = indices
        self._L = int(indices.shape[0])

        allowed = jnp.zeros((size,), dtype=jnp.float32)
        if self._L > 0:
            allowed = allowed.at[indices].set(jnp.float32(1.0))
        self._allowed = allowed.reshape(1, size)          # (1, size), kernel-resident

    # ---- tiling helpers ------------------------------------------------
    def _pick_tiling(self, Bp: int):
        size = self.size
        cap = _vmem_capacity_bytes()
        # Usable per-step budget: ~60% of VMEM, capped at 64 MiB so v5e/v6e
        # (128 MiB) and v7x (64 MiB) both keep comfortable headroom.
        usable = min(int(cap * 0.6), 64 * 1024 * 1024)
        # Double-buffered bytes moved per batch row: u (f32) + thr (f32) + out (int8).
        per_row = 2 * (size * 4 + 4 + size * 1)
        tb = usable // max(per_row, 1)
        tb = int(min(tb, 32768, Bp))
        tb = max(8, (tb // 8) * 8)
        footprint = per_row * tb + 2 * size * 4           # + resident allowed mask
        vmem_limit = int(min(cap, max(32 * 1024 * 1024, footprint + 8 * 1024 * 1024)))
        return tb, vmem_limit

    # ---- forward -------------------------------------------------------
    def forward(self, key, shape=()):
        size, L = self.size, self._L
        B = int(math.prod(shape)) if len(shape) else 1

        # Degenerate cases: no allowed indices (PyTorch leaves the mask all
        # False) or an empty batch -> no kernel launch needed.
        if L == 0 or B == 0:
            return jnp.zeros(tuple(shape) + (size,), dtype=bool)

        k_key, u_key = jax.random.split(key)
        # Single scalar draw: k = 1 + Poisson(lam), shared by the whole batch
        # (matches the PyTorch module).
        k = (1 + jax.random.poisson(k_key, self.lam)).astype(jnp.int32)
        # Per-row uniforms over the full size axis (argsort-of-uniforms sampling).
        u = jax.random.uniform(u_key, (B, size), dtype=jnp.float32)

        # k-th order statistic among *allowed* columns -> per-row threshold.
        # Disallowed columns are pushed to 2.0 so they never rank among the
        # first L; `u <= thr` (ANDed with `allowed` in the kernel) then selects
        # exactly the k smallest allowed uniforms, i.e. k uniformly random
        # distinct allowed indices.  k >= L selects all allowed indices,
        # matching the `masks[..., indices] = True` branch.
        # TODO(synk): the Poisson draw and the sort / order statistic stay in
        # plain JAX (no clean in-kernel sort equivalent).
        u_masked = jnp.where(self._allowed > 0.0, u, jnp.float32(2.0))
        sorted_u = jnp.sort(u_masked, axis=-1)
        k_idx = jnp.minimum(k, L) - 1
        thr = jax.lax.dynamic_slice_in_dim(sorted_u, k_idx, 1, axis=1)   # (B, 1)

        # --- sublane-align the batch axis (pad at most 7 rows) ---
        Bp = _round_up(B, 8)
        if Bp != B:
            u = jnp.pad(u, ((0, Bp - B), (0, 0)), constant_values=2.0)
            thr = jnp.pad(thr, ((0, Bp - B), (0, 0)))

        tb, vmem_limit = self._pick_tiling(Bp)
        grid = (pl.cdiv(Bp, tb),)

        out_i8 = pl.pallas_call(
            _poisson_mask_kernel,
            out_shape=jax.ShapeDtypeStruct((Bp, size), jnp.int8),
            grid=grid,
            in_specs=[
                pl.BlockSpec((tb, size), lambda b: (b, 0)),   # uniforms (pipelined)
                pl.BlockSpec((tb, 1), lambda b: (b, 0)),      # per-row threshold
                pl.BlockSpec((1, size), lambda b: (0, 0)),    # allowed mask (resident)
            ],
            out_specs=pl.BlockSpec((tb, size), lambda b: (b, 0)),
            compiler_params=pltpu.CompilerParams(
                dimension_semantics=("parallel",),            # shard batch across TCs (v7x)
                vmem_limit_bytes=vmem_limit,
            ),
        )(u, thr, self._allowed)

        masks = out_i8[:B].astype(bool)
        return masks.reshape(tuple(shape) + (size,))


if __name__ == "__main__":
    key = jax.random.PRNGKey(0)

    size = 16
    filtr = "1110111011101110"           # 12 allowed positions out of 16
    mask_mod = PoissonMask(size=size, lam=1.0, filtr=filtr)

    masks = mask_mod.forward(key, shape=(2, 4))   # -> bool (2, 4, 16)
    jax.block_until_ready(masks)

    # sanity: dtype/shape, every row has the same number of True entries,
    # the count equals min(k, L), and True entries only appear at allowed indices.
    assert masks.dtype == jnp.bool_ and masks.shape == (2, 4, 16)
    counts = masks.sum(axis=-1).reshape(-1)
    assert bool(jnp.all(counts == counts[0]))
    k_key, _ = jax.random.split(key)
    k = int(1 + jax.random.poisson(k_key, mask_mod.lam))
    L = int(mask_mod.indices.shape[0])
    assert int(counts[0]) == min(k, L)
    allowed = jnp.zeros(size, dtype=bool).at[mask_mod.indices].set(True)
    assert bool(jnp.all(jnp.logical_or(~masks, allowed[None, None, :])))

    print("KERNEL_OK")
</pallas_src>

<mosaic_0001>
module attributes {stable_mosaic.version = 11 : i64} {
  func.func @_poisson_mask_kernel(%arg0: i32, %arg1: memref<8x16xf32, #tpu.memory_space<vmem>>, %arg2: memref<8x1xf32, #tpu.memory_space<vmem>>, %arg3: memref<1x16xf32, #tpu.memory_space<vmem>>, %arg4: memref<8x16xi8, #tpu.memory_space<vmem>>) attributes {dimension_semantics = [#tpu.dimension_semantics<parallel>], iteration_bounds = array<i64: 1>, scalar_prefetch = 0 : i64, scratch_operands = 0 : i64, tpu.core_type = #tpu.core_type<tc>, window_params = [{transform_indices = @transform_0, window_bounds = array<i64: 8, 16>}, {transform_indices = @transform_1, window_bounds = array<i64: 8, 1>}, {pipeline_mode = #tpu.pipeline_mode<synchronous>, transform_indices = @transform_2, window_bounds = array<i64: 1, 16>}, {transform_indices = @transform_3, window_bounds = array<i64: 8, 16>}]} {
    %c0 = arith.constant 0 : index
    %c0_0 = arith.constant 0 : index
    %0 = vector.load %arg1[%c0, %c0_0] : memref<8x16xf32, #tpu.memory_space<vmem>>, vector<8x16xf32>
    %c0_1 = arith.constant 0 : index
    %c0_2 = arith.constant 0 : index
    %1 = vector.load %arg2[%c0_1, %c0_2] : memref<8x1xf32, #tpu.memory_space<vmem>>, vector<8x1xf32>
    %2 = vector.broadcast %1 : vector<8x1xf32> to vector<8x16xf32>
    %3 = arith.cmpf ole, %0, %2 : vector<8x16xf32>
    %c0_3 = arith.constant 0 : index
    %c0_4 = arith.constant 0 : index
    %4 = vector.load %arg3[%c0_3, %c0_4] : memref<1x16xf32, #tpu.memory_space<vmem>>, vector<1x16xf32>
    %cst = arith.constant 0.000000e+00 : f32
    %5 = vector.broadcast %cst : f32 to vector<1x16xf32>
    %6 = arith.cmpf ogt, %4, %5 : vector<1x16xf32>
    %7 = vector.broadcast %6 : vector<1x16xi1> to vector<8x16xi1>
    %8 = arith.andi %3, %7 : vector<8x16xi1>
    %9 = arith.extui %8 : vector<8x16xi1> to vector<8x16xi8>
    %c0_5 = arith.constant 0 : index
    %c0_6 = arith.constant 0 : index
    %10 = vector.load %arg4[%c0_5, %c0_6] : memref<8x16xi8, #tpu.memory_space<vmem>>, vector<8x16xi8>
    tpu.vector_store %arg4[%c0_5, %c0_6], %9 {strides = array<i32>} : memref<8x16xi8, #tpu.memory_space<vmem>>, vector<8x16xi8>,
    return
  }
  func.func @transform_0(%arg0: i32) -> (i32, i32) {
    %c0_i32 = arith.constant 0 : i32
    %c0_i32_0 = arith.constant 0 : i32
    return %arg0, %c0_i32 : i32, i32
  }
  func.func @transform_1(%arg0: i32) -> (i32, i32) {
    %c0_i32 = arith.constant 0 : i32
    %c0_i32_0 = arith.constant 0 : i32
    return %arg0, %c0_i32 : i32, i32
  }
  func.func @transform_2(%arg0: i32) -> (i32, i32) {
    %c0_i32 = arith.constant 0 : i32
    %c0_i32_0 = arith.constant 0 : i32
    %c0_i32_1 = arith.constant 0 : i32
    return %c0_i32, %c0_i32_0 : i32, i32
  }
  func.func @transform_3(%arg0: i32) -> (i32, i32) {
    %c0_i32 = arith.constant 0 : i32
    %c0_i32_0 = arith.constant 0 : i32
    return %arg0, %c0_i32 : i32, i32
  }
}

</mosaic_0001>

<bundles_post_ra>
// kernel: tpu_custom_call.1
= control target key start
LH: loop header
LB: loop body
LE: loop exit
PB: predicated region body
PF: predicated region fallthrough
CT: control target
= control target key end

     0   :  { %s123_s0 = inlined_call_operand.vmem [shape: f32[8,16], index: 0, kind: input, shape index: {}]   ;;  %s124_s1 = inlined_call_operand.vmem [shape: f32[8,1], index: 1, kind: input, shape index: {}]   ;;  %s125_s2 = inlined_call_operand.vmem [shape: f32[1,16], index: 2, kind: input, shape index: {}]   ;;  %s126_s3 = inlined_call_operand.hbm [shape: s8[8,16], index: 3, kind: output, shape index: {}]  }
   0x1   :  { %v18_v0 = vld [vmem:[%s124_s1] sm:$0xff] }
   0x2   :  { %8 = vsyncpa [#allocation3], 0  ;;  %v80_v1 = vmov 0   ;;  %v28_v2 = vlaneseq  ;;  %v25_v3 = vld [vmem:[%s125_s2] sm:$0x1]  ;;  %s81_s1 = smov [#allocation2]  }
   0x3   :  { %55 = vset.pattern.permute.xlu0 %v80_v1  ;;  %vm26_vm0 = vcmp.gt.f32.partialorder %v25_v3, 0.0  ;;  %v17_v8 = vld [vmem:[%s123_s0] sm:$0xff]  ;;  %s45_s18 = sshll.u32 %s81_s1, 4  ;;  %vm37_vm5 = vcmask 123904   ;;  %s46_s18 = int_to_ptr.vmem [resolvable:$true] %s45_s18 }
   0x4   :  { %21 = vperm.xlu0 %55, %v18_v0   ;;  %v29_v4 = vshrl.u32 %v28_v2, 7  ;;  %v27_v6 = vsel %vm26_vm0, 1, %v80_v1  ;;  %s56_s2 = scalar_lea.vmem %s46_s18, 32  ;;  %p61_p1 = scmp.lt.s32.totalorder %s46_s18, %s46_s18 }
   0x5   :  { %p57_p0 = scmp.ne.s32.totalorder %s46_s18, %s56_s2  ;;  %p62_p2 = scmp.lt.s32.totalorder %s56_s2, %s56_s2 }
   0x6   :  { %v30_v5 = vsub.s32 0, %v29_v4 }
   0x7   :  { %p63_p3 = por %p62_p2, %p61_p1 }
   0x8   :  { %v31_v7 = vrot.slane %v27_v6, %v30_v5 }
   0x9   :  { %p64_p4 = pnand %p63_p3, %p57_p0 }
   0xa   :  { %vm32_vm1 = vcmp.eq.s32.totalorder %v31_v7, 1 }
  0x83   :  { %v22_v9 = vpop.permute.xlu0 %21 }
  0x84   :  { %vm24_vm2 = vcmp.le.f32.partialorder %v17_v8, %v22_v9 }
  0x85   :  { %vm33_vm3 = vmand %vm24_vm2, %vm32_vm1 }
  0x86   :  { %vm34_vm4 = vmpackc.low %vm33_vm3, %vm33_vm3 }
  0x87   :  { %vm35_vm6 = vmpackc.even %vm34_vm4, %vm34_vm4 }
  0x88   :  { %v36_v10 = vsel %vm35_vm6, 16843009, %v80_v1 }
  0x89   :  { %38 = vst.msk [vmem:[#allocation2] sm:$0x3] %vm37_vm5, %v36_v10 }
  0x8a   :  { %67 = shalt.err (!%p64_p4)
}
  0x8b   :  { %s68_s20 = scalar_lea.hbm %s126_s3, 32 }
  0x8c   :  { %p69_p5 = scmp.ne.s32.totalorder %s126_s3, %s68_s20  ;;  %p72_p6 = scmp.lt.u32.totalorder %s68_s20, %s126_s3 }
  0x8e   :  { %p74_p7 = pnand %p72_p6, %p69_p5 }
  0x90   :  { %77 = shalt.err (!%p74_p7)
}
  0x91   :  { %48 = dma.vmem_to_hbm [thread:$0]  %s46_s18, 32, %s126_s3, [#allocation3]  }
  0x92   :  { %78 = dma.done.wait [#allocation3], 32  }
  0x93   :  { %79 = vsyncadd [#allocation3], 4294967264 }
  0x94   :  { %52 = vsyncpa [#allocation3], 1 }

</bundles_post_ra>
